<compile_context>
chip_gen: v5e
topology: v5e:2x2
jax: 0.10.0
libtpu: 0.0.40
codegen_flags: <defaults>
</compile_context>

<pallas_src>
import functools

import jax
import jax.numpy as jnp
from jax.experimental import pallas as pl
from jax.experimental.pallas import tpu as pltpu

_LANE = 128


def _pad_lanes(x):
    pad = (-x.shape[-1]) % _LANE
    if pad == 0:
        return x
    widths = [(0, 0)] * (x.ndim - 1) + [(0, pad)]
    return jnp.pad(x, widths)


def _vmem_limit(bytes_needed):
    # Generous headroom, floored at the smallest default scoped VMEM (16 MiB,
    # v5e) and capped at v7x physical VMEM (64 MiB).
    return int(min(64 << 20, max(16 << 20, 2 * bytes_needed + (4 << 20))))


# -----------------------------------------------------------------------------
# Parameter preparation (once per model, NOT per time-step).
# -----------------------------------------------------------------------------
def prepare_gru_params(params, matmul_dtype="bfloat16"):
    """Stack / pad / cast the GRU parameters once.

    Returns a dict of arrays:
      w5    : (5*in, in)  [Wu;Wr;Wh;Uu;Ur] in `matmul_dtype`
      uh    : (in, in)    Uh in `matmul_dtype`
      b_all : (3*in, n_pad) f32, lane-padded [bu;br;bh]

    bf16 is recommended on every generation (v5e's MXU is bf16-native, f32
    matmul is emulated); accumulation and all gate math remain f32.
    """
    dot_dtype = jnp.dtype(matmul_dtype)
    w5 = jnp.concatenate(
        [params["Wu"], params["Wr"], params["Wh"], params["Uu"], params["Ur"]],
        axis=0).astype(dot_dtype)
    uh = params["Uh"].astype(dot_dtype)
    b_all = _pad_lanes(
        jnp.concatenate([params["bu"], params["br"], params["bh"]], axis=0)
    ).astype(jnp.float32)
    return {"w5": w5, "uh": uh, "b_all": b_all}


# -----------------------------------------------------------------------------
# Single-step kernel.
# -----------------------------------------------------------------------------
def _gru_cell_kernel(*refs, in_feats, tie_inputs, dot_dtype):
    if tie_inputs:
        h_ref, w5_ref, uh_ref, b_ref, out_ref = refs
    else:
        z_ref, h_ref, w5_ref, uh_ref, b_ref, out_ref = refs

    h = h_ref[...]                       # f32, used in gate math
    h_mm = h.astype(dot_dtype)

    if tie_inputs:
        # One tall (5*in, in) @ (in, N) matmul covers Wu/Wr/Wh and Uu/Ur.
        g = jnp.dot(w5_ref[...], h_mm, preferred_element_type=jnp.float32)
        wz_u = g[:in_feats]
        wz_r = g[in_feats:2 * in_feats]
        wz_h = g[2 * in_feats:3 * in_feats]
        uh_u = g[3 * in_feats:4 * in_feats]
        uh_r = g[4 * in_feats:]
    else:
        z_mm = z_ref[...].astype(dot_dtype)
        wz = jnp.dot(w5_ref[:3 * in_feats, :], z_mm,
                     preferred_element_type=jnp.float32)       # (3*in, N)
        uu = jnp.dot(w5_ref[3 * in_feats:, :], h_mm,
                     preferred_element_type=jnp.float32)       # (2*in, N)
        wz_u, wz_r, wz_h = (wz[:in_feats], wz[in_feats:2 * in_feats],
                            wz[2 * in_feats:])
        uh_u, uh_r = uu[:in_feats], uu[in_feats:]

    # Biases are sliced from the ref at point of use (short live ranges).
    upd = jax.nn.sigmoid(wz_u + uh_u + b_ref[:in_feats, :])
    rst = jax.nn.sigmoid(wz_r + uh_r + b_ref[in_feats:2 * in_feats, :])

    # Candidate: Uh @ (rst * h) depends on rst -> separate matmul.
    h_reset = (rst * h).astype(dot_dtype)
    cand = jnp.tanh(wz_h
                    + jnp.dot(uh_ref[...], h_reset,
                              preferred_element_type=jnp.float32)
                    + b_ref[2 * in_feats:, :])

    # (1 - upd) * h + upd * cand  ==  h + upd * (cand - h)
    out_ref[...] = (h + upd * (cand - h)).astype(out_ref.dtype)


def gru_cell(prev_q, prepped, z_topk=None):
    """Single GRUCell forward step (matches the PyTorch module).

    prev_q  : (in_feats, out_feats) f32
    prepped : output of prepare_gru_params
    z_topk  : optional (in_feats, out_feats); defaults to prev_q
    """
    in_feats, out_feats = prev_q.shape
    if in_feats % 8 != 0:
        raise ValueError("in_feats must be a multiple of 8 (f32 sublane) for "
                         "cheap gate row-slicing; got %d" % in_feats)

    w5, uh, b_all = prepped["w5"], prepped["uh"], prepped["b_all"]
    n_pad = b_all.shape[1]
    dot_dtype = jnp.dtype(w5.dtype)
    tie_inputs = z_topk is None

    h_pad = _pad_lanes(prev_q)
    if tie_inputs:
        operands = (h_pad, w5, uh, b_all)
    else:
        operands = (_pad_lanes(z_topk), h_pad, w5, uh, b_all)

    kernel = functools.partial(
        _gru_cell_kernel, in_feats=in_feats, tie_inputs=tie_inputs,
        dot_dtype=dot_dtype)

    wbytes = 6 * in_feats * in_feats * dot_dtype.itemsize
    state_bytes = (1 if tie_inputs else 2) * in_feats * n_pad * 4
    bias_bytes = 3 * in_feats * n_pad * 4
    out_bytes = in_feats * n_pad * 4
    needed = wbytes + state_bytes + bias_bytes + out_bytes

    cost = pl.CostEstimate(
        flops=2 * 6 * in_feats * in_feats * n_pad,
        transcendentals=3 * in_feats * n_pad,
        bytes_accessed=needed,
    )

    vmem_spec = pl.BlockSpec(memory_space=pltpu.MemorySpace.VMEM)
    out_pad = pl.pallas_call(
        kernel,
        out_shape=jax.ShapeDtypeStruct((in_feats, n_pad), prev_q.dtype),
        in_specs=[vmem_spec] * len(operands),
        out_specs=vmem_spec,
        compiler_params=pltpu.CompilerParams(
            vmem_limit_bytes=_vmem_limit(needed)),
        cost_estimate=cost,
    )(*operands)

    # For scanned use prefer gru_cell_sequence (keeps state lane-padded and
    # weights resident); here we slice once to match the module's output shape.
    return out_pad[:, :out_feats]


# -----------------------------------------------------------------------------
# Weight-stationary multi-step kernel: T GRU steps in one pallas_call.
# -----------------------------------------------------------------------------
def _gru_seq_kernel(z_ref, h0_ref, w5_ref, uh_ref, b_ref, out_ref, h_scr,
                    *, in_feats, dot_dtype):
    t = pl.program_id(0)

    @pl.when(t == 0)
    def _():
        h_scr[...] = h0_ref[...]

    h = h_scr[...]
    h_mm = h.astype(dot_dtype)
    z_mm = z_ref[...].astype(dot_dtype)

    wz = jnp.dot(w5_ref[:3 * in_feats, :], z_mm,
                 preferred_element_type=jnp.float32)           # (3*in, N)
    uu = jnp.dot(w5_ref[3 * in_feats:, :], h_mm,
                 preferred_element_type=jnp.float32)           # (2*in, N)

    upd = jax.nn.sigmoid(wz[:in_feats] + uu[:in_feats] + b_ref[:in_feats, :])
    rst = jax.nn.sigmoid(wz[in_feats:2 * in_feats] + uu[in_feats:]
                         + b_ref[in_feats:2 * in_feats, :])

    h_reset = (rst * h).astype(dot_dtype)
    cand = jnp.tanh(wz[2 * in_feats:]
                    + jnp.dot(uh_ref[...], h_reset,
                              preferred_element_type=jnp.float32)
                    + b_ref[2 * in_feats:, :])

    h_new = h + upd * (cand - h)
    h_scr[...] = h_new

    @pl.when(t == pl.num_programs(0) - 1)
    def _():
        out_ref[...] = h_new.astype(out_ref.dtype)


def gru_cell_sequence(h0, z_seq, prepped):
    """Apply the GRU cell over z_seq (T, in, out) starting from h0.

    Weights stay VMEM-resident for the whole sequence (constant block index),
    the hidden state lives in VMEM scratch, and only the final state is
    written back.  Returns the final hidden state (in_feats, out_feats).
    """
    in_feats, out_feats = h0.shape
    if in_feats % 8 != 0:
        raise ValueError("in_feats must be a multiple of 8")
    T = z_seq.shape[0]

    w5, uh, b_all = prepped["w5"], prepped["uh"], prepped["b_all"]
    n_pad = b_all.shape[1]
    dot_dtype = jnp.dtype(w5.dtype)

    h_pad = _pad_lanes(h0)
    z_pad = _pad_lanes(z_seq)

    kernel = functools.partial(_gru_seq_kernel, in_feats=in_feats,
                               dot_dtype=dot_dtype)

    wbytes = 6 * in_feats * in_feats * dot_dtype.itemsize
    per_step_io = in_feats * n_pad * 4                       # one z tile / step
    needed = (wbytes + 2 * per_step_io                       # z double-buffer
              + 3 * in_feats * n_pad * 4                     # bias
              + 3 * in_feats * n_pad * 4)                    # h0 + out + scratch

    cost = pl.CostEstimate(
        flops=T * 2 * 6 * in_feats * in_feats * n_pad,
        transcendentals=T * 3 * in_feats * n_pad,
        bytes_accessed=wbytes + T * per_step_io + 5 * in_feats * n_pad * 4,
    )

    out_pad = pl.pallas_call(
        kernel,
        out_shape=jax.ShapeDtypeStruct((in_feats, n_pad), h0.dtype),
        grid=(T,),
        in_specs=[
            pl.BlockSpec((None, in_feats, n_pad), lambda t: (t, 0, 0)),  # z_t
            pl.BlockSpec((in_feats, n_pad), lambda t: (0, 0)),           # h0
            pl.BlockSpec((5 * in_feats, in_feats), lambda t: (0, 0)),    # w5
            pl.BlockSpec((in_feats, in_feats), lambda t: (0, 0)),        # uh
            pl.BlockSpec((3 * in_feats, n_pad), lambda t: (0, 0)),       # bias
        ],
        out_specs=pl.BlockSpec((in_feats, n_pad), lambda t: (0, 0)),
        scratch_shapes=[pltpu.VMEM((in_feats, n_pad), jnp.float32)],
        compiler_params=pltpu.CompilerParams(
            dimension_semantics=("arbitrary",),
            vmem_limit_bytes=_vmem_limit(needed)),
        cost_estimate=cost,
    )(z_pad, h_pad, w5, uh, b_all)

    return out_pad[:, :out_feats]


# -----------------------------------------------------------------------------
# Init + pure-JAX reference (mirrors the PyTorch module exactly).
# -----------------------------------------------------------------------------
def _xavier_uniform(key, shape, dtype=jnp.float32):
    fan_in, fan_out = shape[0], shape[1]
    bound = (6.0 / (fan_in + fan_out)) ** 0.5
    return jax.random.uniform(key, shape, dtype, minval=-bound, maxval=bound)


def init_gru_cell_params(key, in_feats, out_feats):
    keys = jax.random.split(key, 6)
    zeros_bias = jnp.zeros((in_feats, out_feats), jnp.float32)
    return {
        "Wu": _xavier_uniform(keys[0], (in_feats, in_feats)),
        "Uu": _xavier_uniform(keys[1], (in_feats, in_feats)),
        "bu": zeros_bias,
        "Wr": _xavier_uniform(keys[2], (in_feats, in_feats)),
        "Ur": _xavier_uniform(keys[3], (in_feats, in_feats)),
        "br": zeros_bias,
        "Wh": _xavier_uniform(keys[4], (in_feats, in_feats)),
        "Uh": _xavier_uniform(keys[5], (in_feats, in_feats)),
        "bh": zeros_bias,
    }


def gru_cell_reference(prev_q, params, z_topk=None):
    if z_topk is None:
        z_topk = prev_q
    sig = jax.nn.sigmoid
    upd = sig(params["Wu"] @ z_topk + params["Uu"] @ prev_q + params["bu"])
    rst = sig(params["Wr"] @ z_topk + params["Ur"] @ prev_q + params["br"])
    h_cap = rst * prev_q
    h_cap = jnp.tanh(params["Wh"] @ z_topk + params["Uh"] @ h_cap + params["bh"])
    return (1.0 - upd) * prev_q + upd * h_cap


if __name__ == "__main__":
    in_feats, out_feats, T = 32, 16, 8

    key = jax.random.PRNGKey(0)
    k_params, k_q, k_z, k_seq = jax.random.split(key, 4)

    params = init_gru_cell_params(k_params, in_feats, out_feats)
    prev_q = jax.random.normal(k_q, (in_feats, out_feats), jnp.float32)
    z_topk = jax.random.normal(k_z, (in_feats, out_feats), jnp.float32)
    z_seq = jax.random.normal(k_seq, (T, in_feats, out_feats), jnp.float32)

    # Weights prepared once (stacked / padded / cast) — not per step.
    prepped_f32 = prepare_gru_params(params, matmul_dtype="float32")
    prepped_bf16 = prepare_gru_params(params, matmul_dtype="bfloat16")

    # Single step: explicit z_topk (f32 and bf16 MXU paths) and tied default.
    out_f32 = gru_cell(prev_q, prepped_f32, z_topk)
    out_tied = gru_cell(prev_q, prepped_f32)
    out_bf16 = gru_cell(prev_q, prepped_bf16, z_topk)

    # Weight-stationary multi-step path (weights resident across all T steps).
    seq_f32 = gru_cell_sequence(prev_q, z_seq, prepped_f32)
    seq_bf16 = gru_cell_sequence(prev_q, z_seq, prepped_bf16)

    jax.block_until_ready((out_f32, out_tied, out_bf16, seq_f32, seq_bf16))

    ref = gru_cell_reference(prev_q, params, z_topk)
    ref_tied = gru_cell_reference(prev_q, params)
    h_ref = prev_q
    for t in range(T):
        h_ref = gru_cell_reference(h_ref, params, z_seq[t])

    assert out_f32.shape == (in_feats, out_feats)
    assert jnp.allclose(out_f32, ref, atol=1e-5, rtol=1e-5)
    assert jnp.allclose(out_tied, ref_tied, atol=1e-5, rtol=1e-5)
    assert jnp.allclose(out_bf16, ref, atol=5e-2, rtol=5e-2)
    assert seq_f32.shape == (in_feats, out_feats)
    assert jnp.allclose(seq_f32, h_ref, atol=1e-4, rtol=1e-4)
    assert jnp.allclose(seq_bf16, h_ref, atol=1e-1, rtol=1e-1)

    print("KERNEL_OK")
</pallas_src>

<mosaic_0001>
module attributes {stable_mosaic.version = 11 : i64} {
  func.func @_gru_cell_kernel(%arg0: memref<32x128xf32, #tpu.memory_space<vmem>>, %arg1: memref<32x128xf32, #tpu.memory_space<vmem>>, %arg2: memref<160x32xf32, #tpu.memory_space<vmem>>, %arg3: memref<32x32xf32, #tpu.memory_space<vmem>>, %arg4: memref<96x128xf32, #tpu.memory_space<vmem>>, %arg5: memref<32x128xf32, #tpu.memory_space<vmem>>) attributes {dimension_semantics = [], scalar_prefetch = 0 : i64, scratch_operands = 0 : i64, tpu.core_type = #tpu.core_type<tc>} {
    %c0 = arith.constant 0 : index
    %c0_0 = arith.constant 0 : index
    %0 = vector.load %arg1[%c0, %c0_0] : memref<32x128xf32, #tpu.memory_space<vmem>>, vector<32x128xf32>
    %c0_1 = arith.constant 0 : index
    %c0_2 = arith.constant 0 : index
    %1 = vector.load %arg0[%c0_1, %c0_2] : memref<32x128xf32, #tpu.memory_space<vmem>>, vector<32x128xf32>
    %c0_3 = arith.constant 0 : index
    %c0_4 = arith.constant 0 : index
    %2 = vector.load %arg2[%c0_3, %c0_4] : memref<160x32xf32, #tpu.memory_space<vmem>>, vector<96x32xf32>
    %cst = arith.constant dense<0.000000e+00> : vector<96x128xf32>
    %3 = tpu.matmul %2, %1, %cst {dimension_numbers = #tpu.dot_dimension_numbers<[1], [0], [0], [1], [0, 0, 1, 1], [], []>} : vector<96x32xf32>, vector<32x128xf32>, vector<96x128xf32> -> vector<96x128xf32>
    %c96 = arith.constant 96 : index
    %c0_5 = arith.constant 0 : index
    %4 = vector.load %arg2[%c96, %c0_5] : memref<160x32xf32, #tpu.memory_space<vmem>>, vector<64x32xf32>
    %cst_6 = arith.constant dense<0.000000e+00> : vector<64x128xf32>
    %5 = tpu.matmul %4, %0, %cst_6 {dimension_numbers = #tpu.dot_dimension_numbers<[1], [0], [0], [1], [0, 0, 1, 1], [], []>} : vector<64x32xf32>, vector<32x128xf32>, vector<64x128xf32> -> vector<64x128xf32>
    %6 = vector.extract_strided_slice %3 {offsets = [0, 0], sizes = [32, 128], strides = [1, 1]} : vector<96x128xf32> to vector<32x128xf32>
    %7 = vector.extract_strided_slice %3 {offsets = [32, 0], sizes = [32, 128], strides = [1, 1]} : vector<96x128xf32> to vector<32x128xf32>
    %8 = vector.extract_strided_slice %3 {offsets = [64, 0], sizes = [32, 128], strides = [1, 1]} : vector<96x128xf32> to vector<32x128xf32>
    %9 = vector.extract_strided_slice %5 {offsets = [0, 0], sizes = [32, 128], strides = [1, 1]} : vector<64x128xf32> to vector<32x128xf32>
    %10 = vector.extract_strided_slice %5 {offsets = [32, 0], sizes = [32, 128], strides = [1, 1]} : vector<64x128xf32> to vector<32x128xf32>
    %11 = arith.addf %6, %9 : vector<32x128xf32>
    %c0_7 = arith.constant 0 : index
    %c0_8 = arith.constant 0 : index
    %12 = vector.load %arg4[%c0_7, %c0_8] : memref<96x128xf32, #tpu.memory_space<vmem>>, vector<32x128xf32>
    %13 = arith.addf %11, %12 : vector<32x128xf32>
    %14 = arith.negf %13 : vector<32x128xf32>
    %15 = math.exp %14 : vector<32x128xf32>
    %cst_9 = arith.constant 1.000000e+00 : f32
    %16 = vector.broadcast %cst_9 : f32 to vector<32x128xf32>
    %17 = arith.addf %16, %15 : vector<32x128xf32>
    %18 = arith.divf %16, %17 : vector<32x128xf32>
    %19 = arith.addf %7, %10 : vector<32x128xf32>
    %c32 = arith.constant 32 : index
    %c0_10 = arith.constant 0 : index
    %20 = vector.load %arg4[%c32, %c0_10] : memref<96x128xf32, #tpu.memory_space<vmem>>, vector<32x128xf32>
    %21 = arith.addf %19, %20 : vector<32x128xf32>
    %22 = arith.negf %21 : vector<32x128xf32>
    %23 = math.exp %22 : vector<32x128xf32>
    %cst_11 = arith.constant 1.000000e+00 : f32
    %24 = vector.broadcast %cst_11 : f32 to vector<32x128xf32>
    %25 = arith.addf %24, %23 : vector<32x128xf32>
    %26 = arith.divf %24, %25 : vector<32x128xf32>
    %27 = arith.mulf %26, %0 : vector<32x128xf32>
    %c0_12 = arith.constant 0 : index
    %c0_13 = arith.constant 0 : index
    %28 = vector.load %arg3[%c0_12, %c0_13] : memref<32x32xf32, #tpu.memory_space<vmem>>, vector<32x32xf32>
    %cst_14 = arith.constant dense<0.000000e+00> : vector<32x128xf32>
    %29 = tpu.matmul %28, %27, %cst_14 {dimension_numbers = #tpu.dot_dimension_numbers<[1], [0], [0], [1], [0, 0, 1, 1], [], []>} : vector<32x32xf32>, vector<32x128xf32>, vector<32x128xf32> -> vector<32x128xf32>
    %30 = arith.addf %8, %29 : vector<32x128xf32>
    %c64 = arith.constant 64 : index
    %c0_15 = arith.constant 0 : index
    %31 = vector.load %arg4[%c64, %c0_15] : memref<96x128xf32, #tpu.memory_space<vmem>>, vector<32x128xf32>
    %32 = arith.addf %30, %31 : vector<32x128xf32>
    %33 = math.tanh %32 : vector<32x128xf32>
    %34 = arith.subf %33, %0 : vector<32x128xf32>
    %35 = arith.mulf %18, %34 : vector<32x128xf32>
    %36 = arith.addf %0, %35 : vector<32x128xf32>
    %c0_16 = arith.constant 0 : index
    %c0_17 = arith.constant 0 : index
    %37 = vector.load %arg5[%c0_16, %c0_17] : memref<32x128xf32, #tpu.memory_space<vmem>>, vector<32x128xf32>
    tpu.vector_store %arg5[%c0_16, %c0_17], %36 {strides = array<i32>} : memref<32x128xf32, #tpu.memory_space<vmem>>, vector<32x128xf32>,
    return
  }
}

</mosaic_0001>

<bundles_post_ra>
// kernel: tpu_custom_call.1
= control target key start
LH: loop header
LB: loop body
LE: loop exit
PB: predicated region body
PF: predicated region fallthrough
CT: control target
= control target key end

     0   :  { %vm41_vm0 = vcmask 261120   ;;  %s855_s0 = inlined_call_operand.vmem [shape: f32[32,128], index: 0, kind: input, shape index: {}]   ;;  %s856_s1 = inlined_call_operand.vmem [shape: f32[32,128], index: 1, kind: input, shape index: {}]   ;;  %s857_s2 = inlined_call_operand.vmem [shape: f32[160,32], index: 2, kind: input, shape index: {}]   ;;  %s858_s3 = inlined_call_operand.vmem [shape: f32[32,32], index: 3, kind: input, shape index: {}]   ;;  %s859_s4 = inlined_call_operand.vmem [shape: f32[96,128], index: 4, kind: input, shape index: {}]   ;;  %s860_s5 = inlined_call_operand.hbm [shape: f32[32,128], index: 5, kind: output, shape index: {}]  }
   0x1   :  { %v28_v0 = vld [vmem:[%s855_s0 + $0x18] sm:$0xff]  ;;  %v27_v2 = vld [vmem:[%s855_s0 + $0x10] sm:$0xff]  ;;  %v26_v4 = vld [vmem:[%s855_s0 + $0x8] sm:$0xff] }
   0x2   :  { %v627_v1 = vld [vmem:[%s856_s1 + $0x18] sm:$0xff]  ;;  %90 = vmatpush.msra.mxu0 %v28_v0  ;;  %511 = vmatpush.msra.mxu3 %v28_v0  ;;  %v635_v3 = vld [vmem:[%s856_s1 + $0x10] sm:$0xff]  ;;  %v645_v5 = vld [vmem:[%s856_s1 + $0x8] sm:$0xff] }
   0x3   :  { %175 = vmatpush.msra.mxu1 %v627_v1  ;;  %515 = vmatpush.msra.mxu2 %v627_v1  ;;  %v25_v6 = vld [vmem:[%s855_s0] sm:$0xff]  ;;  %v35_v9 = vld [vmem:[%s857_s2 + $0x30] sm:$0xff] }
   0x4   :  { %91 = vmatpush.msra.mxu0 %v27_v2  ;;  %512 = vmatpush.msra.mxu3 %v27_v2  ;;  %v655_v7 = vld [vmem:[%s856_s1] sm:$0xff]  ;;  %v137_v11 = vld [vmem:[%s857_s2 + $0x90] sm:$0xff] }
   0x5   :  { %176 = vmatpush.msra.mxu1 %v635_v3  ;;  %516 = vmatpush.msra.mxu2 %v635_v3  ;;  %v29_v8 = vld [vmem:[%s857_s2] sm:$0xff] }
   0x6   :  { %92 = vmatpush.msra.mxu0 %v26_v4  ;;  %513 = vmatpush.msra.mxu3 %v26_v4  ;;  %v131_v10 = vld [vmem:[%s857_s2 + $0x60] sm:$0xff] }
   0x7   :  { %177 = vmatpush.msra.mxu1 %v645_v5  ;;  %517 = vmatpush.msra.mxu2 %v645_v5 }
   0x8   :  { %93 = vmatpush.msra.mxu0 %v25_v6  ;;  %514 = vmatpush.msra.mxu3 %v25_v6 }
   0x9   :  { %10 = vsyncpa [#allocation3], 0  ;;  %178 = vmatpush.msra.mxu1 %v655_v7  ;;  %518 = vmatpush.msra.mxu2 %v655_v7  ;;  %v30_v12 = vld [vmem:[%s857_s2 + $0x8] sm:$0xff]  ;;  %v36_v13 = vld [vmem:[%s857_s2 + $0x38] sm:$0xff]  ;;  %s467_s26 = sshll.u32 %s860_s5, 4  ;;  %s589_s27 = smov 128   ;;  %s468_s26 = int_to_ptr.hbm [resolvable:$true] %s467_s26 }
   0xa   :  { %479 = vmatmul.msk.f32.vlgmr.msra.gmra.mxu0 %vm41_vm0, %v29_v8  ;;  %485 = vmatmul.msk.f32.vlgmr.msra.gmra.mxu3 %vm41_vm0, %v35_v9  ;;  %v132_v14 = vld [vmem:[%s857_s2 + $0x68] sm:$0xff]  ;;  %v138_v15 = vld [vmem:[%s857_s2 + $0x98] sm:$0xff]  ;;  %v31_v16 = vld [vmem:[%s857_s2 + $0x10] sm:$0xff] }
   0xb   :  { %491 = vmatmul.msk.f32.vlgmr.msra.gmra.mxu1 %vm41_vm0, %v131_v10  ;;  %497 = vmatmul.msk.f32.vlgmr.msra.gmra.mxu2 %vm41_vm0, %v137_v11  ;;  %v133_v17 = vld [vmem:[%s857_s2 + $0x70] sm:$0xff]  ;;  %v32_v18 = vld [vmem:[%s857_s2 + $0x18] sm:$0xff]  ;;  %v33_v20 = vld [vmem:[%s857_s2 + $0x20] sm:$0xff] }
   0xc   :  { %v134_v19 = vld [vmem:[%s857_s2 + $0x78] sm:$0xff]  ;;  %v135_v21 = vld [vmem:[%s857_s2 + $0x80] sm:$0xff]  ;;  %v34_v22 = vld [vmem:[%s857_s2 + $0x28] sm:$0xff] }
   0xd   :  { %v136_v23 = vld [vmem:[%s857_s2 + $0x88] sm:$0xff]  ;;  %v298_v29 = vld [vmem:[%s859_s4 + $0x30] sm:$0xff]  ;;  %v299_v38 = vld [vmem:[%s859_s4 + $0x38] sm:$0xff] }
   0xe   :  { %v296_v57 = vld [vmem:[%s859_s4 + $0x20] sm:$0xff]  ;;  %v209_v8 = vld [vmem:[%s859_s4 + $0x8] sm:$0xff] }
  0x12   :  { %480 = vmatmul.msk.f32.gmra.mxu0 %vm41_vm0, %v30_v12  ;;  %486 = vmatmul.msk.f32.gmra.mxu3 %vm41_vm0, %v36_v13  ;;  %v297_v13 = vld [vmem:[%s859_s4 + $0x28] sm:$0xff] }
  0x13   :  { %492 = vmatmul.msk.f32.gmra.mxu1 %vm41_vm0, %v132_v14  ;;  %498 = vmatmul.msk.f32.gmra.mxu2 %vm41_vm0, %v138_v15 }
  0x1a   :  { %481 = vmatmul.msk.f32.gmra.mxu0 %vm41_vm0, %v31_v16 }
  0x1b   :  { %493 = vmatmul.msk.f32.gmra.mxu1 %vm41_vm0, %v133_v17 }
  0x22   :  { %482 = vmatmul.msk.f32.gmra.mxu0 %vm41_vm0, %v32_v18 }
  0x23   :  { %494 = vmatmul.msk.f32.gmra.mxu1 %vm41_vm0, %v134_v19 }
  0x2a   :  { %483 = vmatmul.msk.f32.gmra.mxu0 %vm41_vm0, %v33_v20 }
  0x2b   :  { %495 = vmatmul.msk.f32.gmra.mxu1 %vm41_vm0, %v135_v21 }
  0x32   :  { %484 = vmatmul.msk.f32.gmra.mxu0 %vm41_vm0, %v34_v22 }
  0x33   :  { %496 = vmatmul.msk.f32.gmra.mxu1 %vm41_vm0, %v136_v23 }
  0x87   :  { %v95_v24 = vpop.f32.mrf.mxu0 }
  0x88   :  { %v180_v25 = vpop.f32.mrf.mxu1 }
  0x89   :  { %v725_v26 = vadd.f32 %v180_v25, %v95_v24  ;;  %v37_v25 = vld [vmem:[%s857_s2 + $0x40] sm:$0xff] }
  0x8a   :  { %487 = vmatmul.msk.f32.gmra.mxu3 %vm41_vm0, %v37_v25 }
  0x8d   :  { %v113_v27 = vpop.f32.mrf.mxu3 }
  0x8e   :  { %v198_v28 = vpop.f32.mrf.mxu2 }
  0x8f   :  { %v294_v30 = vadd.f32 %v198_v28, %v113_v27  ;;  %v98_v31 = vpop.f32.mrf.mxu0 }
  0x90   :  { %v183_v32 = vpop.f32.mrf.mxu1 }
  0x91   :  { %v302_v33 = vadd.f32 %v298_v29, %v294_v30  ;;  %v730_v34 = vadd.f32 %v183_v32, %v98_v31  ;;  %v38_v31 = vld [vmem:[%s857_s2 + $0x48] sm:$0xff] }
  0x92   :  { %488 = vmatmul.msk.f32.gmra.mxu3 %vm41_vm0, %v38_v31 }
  0x93   :  { %v505_v35 = vmul.f32 -1.442695, %v302_v33 }
  0x95   :  { %522 = vpow2.f32 %v505_v35  ;;  %v116_v36 = vpop.f32.mrf.mxu3 }
  0x96   :  { %v201_v37 = vpop.f32.mrf.mxu2 }
  0x97   :  { %v295_v39 = vadd.f32 %v201_v37, %v116_v36  ;;  %v101_v40 = vpop.f32.mrf.mxu0 }
  0x98   :  { %v186_v41 = vpop.f32.mrf.mxu1 }
  0x99   :  { %v303_v42 = vadd.f32 %v299_v38, %v295_v39  ;;  %v735_v43 = vadd.f32 %v186_v41, %v101_v40  ;;  %v39_v38 = vld [vmem:[%s857_s2 + $0x50] sm:$0xff] }
  0x9a   :  { %489 = vmatmul.msk.f32.gmra.mxu3 %vm41_vm0, %v39_v38 }
  0x9b   :  { %v523_v44 = vpop.eup %522  ;;  %v506_v45 = vmul.f32 -1.442695, %v303_v42 }
  0x9c   :  { %v318_v46 = vadd.f32 1.0, %v523_v44 }
  0x9d   :  { %524 = vpow2.f32 %v506_v45 }
  0x9e   :  { %526 = vrcp.f32 %v318_v46  ;;  %vm355_vm1 = vweird.f32 %v318_v46  ;;  %v361_v62 = vand.u32 2147483648, %v318_v46  ;;  %v359_v4 = vand.u32 2147483647, %v318_v46 }
  0x9f   :  { %v104_v47 = vpop.f32.mrf.mxu0 }
  0xa0   :  { %v189_v48 = vpop.f32.mrf.mxu1  ;;  %v362_v14 = vor.u32 1.1754944e-38, %v361_v62  ;;  %vm360_vm6 = vcmp.eq.f32.partialorder %v359_v4, 8.507059e+37  ;;  %v385_v62 = vld [vmem:[%s858_s3 + $0x8] sm:$0xff] }
  0xa1   :  { %v737_v49 = vadd.f32 %v189_v48, %v104_v47 }
  0xa3   :  { %v525_v50 = vpop.eup %524 }
  0xa4   :  { %v527_v51 = vpop.eup %526  ;;  %v319_v52 = vadd.f32 1.0, %v525_v50 }
  0xa5   :  { %v351_v53 = vmul.f32 %v527_v51, %v318_v46  ;;  %vm356_vm2 = vweird.f32 %v527_v51 }
  0xa6   :  { %528 = vrcp.f32 %v319_v52  ;;  %vm370_vm3 = vweird.f32 %v319_v52  ;;  %v376_v6 = vand.u32 2147483648, %v319_v52  ;;  %vm742_vm4 = vmor %vm355_vm1, %vm356_vm2  ;;  %v374_v11 = vand.u32 2147483647, %v319_v52 }
  0xa7   :  { %v107_v54 = vpop.f32.mrf.mxu0  ;;  %v352_v55 = vsub.f32 1.0, %v351_v53 }
  0xa8   :  { %v192_v56 = vpop.f32.mrf.mxu1  ;;  %v377_v18 = vor.u32 1.1754944e-38, %v376_v6  ;;  %vm375_vm8 = vcmp.eq.f32.partialorder %v374_v11, 8.507059e+37  ;;  %v210_v11 = vld [vmem:[%s859_s4 + $0x10] sm:$0xff] }
  0xa9   :  { %v292_v58 = vadd.f32 %v192_v56, %v107_v54  ;;  %v353_v59 = vmul.f32 %v527_v51, %v352_v55 }
  0xab   :  { %v300_v60 = vadd.f32 %v296_v57, %v292_v58  ;;  %v354_v2 = vadd.f32 %v527_v51, %v353_v59 }
  0xac   :  { %v529_v61 = vpop.eup %528 }
  0xad   :  { %v503_v63 = vmul.f32 -1.442695, %v300_v60  ;;  %v366_v0 = vmul.f32 %v529_v61, %v319_v52  ;;  %vm371_vm5 = vweird.f32 %v529_v61  ;;  %v358_v17 = vsel %vm742_vm4, %v527_v51, %v354_v2  ;;  %v40_v51 = vld [vmem:[%s857_s2 + $0x58] sm:$0xff]  ;;  %v208_v2 = vld [vmem:[%s859_s4] sm:$0xff]  ;;  %s590_s2 = smov 8  }
  0xae   :  { %vm372_vm7 = vmor %vm370_vm3, %vm371_vm5  ;;  %v363_v21 = vsel %vm360_vm6, %v362_v14, %v358_v17  ;;  %490 = vmatmul.msk.f32.gmra.mxu3 %vm41_vm0, %v40_v51  ;;  %v212_v4 = vadd.f32 %v208_v2, %v725_v26  ;;  %v211_v26 = vld [vmem:[%s859_s4 + $0x18] sm:$0xff] }
  0xaf   :  { %530 = vpow2.f32 %v503_v63  ;;  %v110_v9 = vpop.f32.mrf.mxu0  ;;  %v367_v10 = vsub.f32 1.0, %v366_v0  ;;  %v382_v30 = vmul.f32 %v363_v21, %v635_v3  ;;  %v386_v63 = vld [vmem:[%s858_s3 + $0x10] sm:$0xff]  ;;  %v387_v0 = vld [vmem:[%s858_s3 + $0x18] sm:$0xff] }
  0xb0   :  { %v195_v12 = vpop.f32.mrf.mxu1  ;;  %v499_v6 = vmul.f32 -1.442695, %v212_v4 }
  0xb1   :  { %v293_v15 = vadd.f32 %v195_v12, %v110_v9  ;;  %v368_v16 = vmul.f32 %v529_v61, %v367_v10  ;;  %v213_v9 = vadd.f32 %v209_v8, %v730_v34  ;;  %v215_v34 = vadd.f32 %v211_v26, %v737_v49 }
  0xb3   :  { %v301_v19 = vadd.f32 %v297_v13, %v293_v15  ;;  %v369_v20 = vadd.f32 %v529_v61, %v368_v16  ;;  %v500_v10 = vmul.f32 -1.442695, %v213_v9  ;;  %v214_v13 = vadd.f32 %v210_v11, %v735_v43 }
  0xb5   :  { %v531_v22 = vpop.eup %530  ;;  %v504_v23 = vmul.f32 -1.442695, %v301_v19  ;;  %v373_v24 = vsel %vm372_vm7, %v529_v61, %v369_v20  ;;  %v384_v61 = vld [vmem:[%s858_s3] sm:$0xff]  ;;  %v501_v15 = vmul.f32 -1.442695, %v214_v13 }
  0xb6   :  { %v316_v27 = vadd.f32 1.0, %v531_v22  ;;  %v378_v28 = vsel %vm375_vm8, %v377_v18, %v373_v24  ;;  %v502_v19 = vmul.f32 -1.442695, %v215_v34 }
  0xb7   :  { %532 = vpow2.f32 %v504_v23  ;;  %v383_v29 = vmul.f32 %v378_v28, %v627_v1 }
  0xb8   :  { %534 = vrcp.f32 %v316_v27  ;;  %vm325_vm10 = vweird.f32 %v316_v27  ;;  %v331_v46 = vand.u32 2147483648, %v316_v27  ;;  %v329_v50 = vand.u32 2147483647, %v316_v27 }
  0xb9   :  { %412 = vmatpush.msrb.mxu2 %v383_v29 }
  0xba   :  { %v332_v55 = vor.u32 1.1754944e-38, %v331_v46  ;;  %vm330_vm1 = vcmp.eq.f32.partialorder %v329_v50, 8.507059e+37 }
  0xbb   :  { %413 = vmatpush.msrb.mxu2 %v382_v30 }
  0xbd   :  { %v533_v32 = vpop.eup %532 }
  0xbe   :  { %v535_v33 = vpop.eup %534  ;;  %v317_v35 = vadd.f32 1.0, %v533_v32 }
  0xbf   :  { %v321_v36 = vmul.f32 %v535_v33, %v316_v27  ;;  %vm326_vm9 = vweird.f32 %v535_v33  ;;  %v433_v27 = vld [vmem:[%s859_s4 + $0x40] sm:$0xff] }
  0xc0   :  { %536 = vrcp.f32 %v317_v35  ;;  %v346_v45 = vand.u32 2147483648, %v317_v35  ;;  %v344_v48 = vand.u32 2147483647, %v317_v35  ;;  %vm327_vm12 = vmor %vm325_vm10, %vm326_vm9  ;;  %vm340_vm13 = vweird.f32 %v317_v35 }
  0xc1   :  { %v322_v37 = vsub.f32 1.0, %v321_v36  ;;  %538 = vpow2.f32 %v499_v6 }
  0xc2   :  { %v347_v54 = vor.u32 1.1754944e-38, %v346_v45  ;;  %vm345_vm15 = vcmp.eq.f32.partialorder %v344_v48, 8.507059e+37  ;;  %540 = vpow2.f32 %v500_v10 }
  0xc3   :  { %v323_v39 = vmul.f32 %v535_v33, %v322_v37 }
  0xc5   :  { %v324_v44 = vadd.f32 %v535_v33, %v323_v39 }
  0xc6   :  { %v537_v40 = vpop.eup %536 }
  0xc7   :  { %v336_v41 = vmul.f32 %v537_v40, %v317_v35  ;;  %vm341_vm11 = vweird.f32 %v537_v40  ;;  %v328_v53 = vsel %vm327_vm12, %v535_v33, %v324_v44  ;;  %v539_v12 = vpop.eup %538 }
  0xc8   :  { %vm342_vm14 = vmor %vm340_vm13, %vm341_vm11  ;;  %v333_v58 = vsel %vm330_vm1, %v332_v55, %v328_v53  ;;  %v228_v14 = vadd.f32 1.0, %v539_v12  ;;  %v541_v16 = vpop.eup %540 }
  0xc9   :  { %v337_v42 = vsub.f32 1.0, %v336_v41  ;;  %v380_v60 = vmul.f32 %v333_v58, %v655_v7  ;;  %v804_v17 = vadd.f32 1.0, %v541_v16  ;;  %v434_v41 = vld [vmem:[%s859_s4 + $0x48] sm:$0xff] }
  0xca   :  { %542 = vrcp.f32 %v228_v14  ;;  %v243_v38 = vand.u32 2147483648, %v228_v14  ;;  %vm237_vm2 = vweird.f32 %v228_v14  ;;  %v241_v39 = vand.u32 2147483647, %v228_v14 }
  0xcb   :  { %v338_v47 = vmul.f32 %v537_v40, %v337_v42  ;;  %544 = vpow2.f32 %v501_v15  ;;  %v258_v58 = vand.u32 2147483648, %v804_v17  ;;  %vm252_vm6 = vweird.f32 %v804_v17 }
  0xcc   :  { %546 = vrcp.f32 %v804_v17  ;;  %v244_v48 = vor.u32 1.1754944e-38, %v243_v38  ;;  %vm242_vm4 = vcmp.eq.f32.partialorder %v241_v39, 8.507059e+37 }
  0xcd   :  { %v339_v52 = vadd.f32 %v537_v40, %v338_v47  ;;  %548 = vpow2.f32 %v502_v19  ;;  %v259_v8 = vor.u32 1.1754944e-38, %v258_v58 }
  0xcf   :  { %v343_v56 = vsel %vm342_vm14, %v537_v40, %v339_v52 }
  0xd0   :  { %v348_v57 = vsel %vm345_vm15, %v347_v54, %v343_v56  ;;  %v543_v18 = vpop.eup %542 }
  0xd1   :  { %v381_v59 = vmul.f32 %v348_v57, %v645_v5  ;;  %v545_v21 = vpop.eup %544  ;;  %v233_v43 = vmul.f32 %v543_v18, %v228_v14 }
  0xd2   :  { %v807_v22 = vadd.f32 1.0, %v545_v21  ;;  %v547_v24 = vpop.eup %546 }
  0xd3   :  { %414 = vmatpush.msrb.mxu2 %v381_v59  ;;  %v234_v23 = vsub.f32 1.0, %v233_v43  ;;  %v549_v28 = vpop.eup %548  ;;  %v248_v30 = vmul.f32 %v547_v24, %v804_v17  ;;  %vm253_vm5 = vweird.f32 %v547_v24 }
  0xd4   :  { %550 = vrcp.f32 %v807_v22  ;;  %v814_v33 = vadd.f32 1.0, %v549_v28  ;;  %vm254_vm7 = vmor %vm252_vm6, %vm253_vm5  ;;  %v273_v15 = vand.u32 2147483648, %v807_v22  ;;  %vm267_vm10 = vweird.f32 %v807_v22 }
  0xd5   :  { %415 = vmatpush.msrb.mxu2 %v380_v60  ;;  %v235_v29 = vmul.f32 %v543_v18, %v234_v23  ;;  %v249_v35 = vsub.f32 1.0, %v248_v30  ;;  %v256_v60 = vand.u32 2147483647, %v804_v17  ;;  %v271_v16 = vand.u32 2147483647, %v807_v22  ;;  %v436_v17 = vld [vmem:[%s859_s4 + $0x58] sm:$0xff] }
  0xd6   :  { %507 = vmatmul.msk.f32.vlgmr.msrb.gmra.mxu2 %vm41_vm0, %v384_v61  ;;  %v274_v43 = vor.u32 1.1754944e-38, %v273_v15  ;;  %vm282_vm14 = vweird.f32 %v814_v33  ;;  %v286_v28 = vand.u32 2147483647, %v814_v33 }
  0xd7   :  { %v236_v36 = vadd.f32 %v543_v18, %v235_v29  ;;  %v250_v44 = vmul.f32 %v547_v24, %v249_v35  ;;  %vm257_vm8 = vcmp.eq.f32.partialorder %v256_v60, 8.507059e+37  ;;  %vm272_vm12 = vcmp.eq.f32.partialorder %v271_v16, 8.507059e+37 }
  0xd8   :  { %vm287_vm1 = vcmp.eq.f32.partialorder %v286_v28, 8.507059e+37 }
  0xd9   :  { %v251_v56 = vadd.f32 %v547_v24, %v250_v44 }
  0xda   :  { %v816_v37 = vpop.eup %550 }
  0xdb   :  { %v263_v45 = vmul.f32 %v816_v37, %v807_v22  ;;  %v255_v4 = vsel %vm254_vm7, %v547_v24, %v251_v56  ;;  %vm268_vm9 = vweird.f32 %v816_v37 }
  0xdc   :  { %v260_v10 = vsel %vm257_vm8, %v259_v8, %v255_v4  ;;  %vm269_vm11 = vmor %vm267_vm10, %vm268_vm9 }
  0xdd   :  { %v264_v54 = vsub.f32 1.0, %v263_v45 }
  0xde   :  { %508 = vmatmul.msk.f32.gmra.mxu2 %vm41_vm0, %v385_v62  ;;  %v435_v62 = vld [vmem:[%s859_s4 + $0x50] sm:$0xff]  ;;  %s588_s4 = smov [#allocation2]  }
  0xdf   :  { %s465_s23 = sshll.u32 %s588_s4, 4  ;;  %s466_s23 = int_to_ptr.vmem [resolvable:$true] %s465_s23 }
  0xe6   :  { %509 = vmatmul.msk.f32.gmra.mxu2 %vm41_vm0, %v386_v63 }
  0xee   :  { %510 = vmatmul.msk.f32.gmra.mxu2 %vm41_vm0, %v387_v0  ;;  %vm238_vm0 = vweird.f32 %v543_v18  ;;  %v265_v0 = vmul.f32 %v816_v37, %v264_v54 }
  0xef   :  { %vm239_vm3 = vmor %vm237_vm2, %vm238_vm0 }
  0xf0   :  { %v240_v46 = vsel %vm239_vm3, %v543_v18, %v236_v36  ;;  %v266_v13 = vadd.f32 %v816_v37, %v265_v0 }
  0xf1   :  { %v245_v53 = vsel %vm242_vm4, %v244_v48, %v240_v46 }
 0x10d   :  { %v119_v20 = vpop.f32.mrf.mxu3 }
 0x115   :  { %v122_v31 = vpop.f32.mrf.mxu3 }
 0x11d   :  { %v125_v52 = vpop.f32.mrf.mxu3 }
 0x131   :  { %v128_v14 = vpop.f32.mrf.mxu3 }
 0x159   :  { %v417_v25 = vpop.f32.mrf.mxu2 }
 0x15a   :  { %v429_v49 = vadd.f32 %v417_v25, %v119_v20  ;;  %v270_v20 = vsel %vm269_vm11, %v816_v37, %v266_v13 }
 0x15c   :  { %v437_v32 = vadd.f32 %v433_v27, %v429_v49  ;;  %v288_v27 = vand.u32 2147483648, %v814_v33 }
 0x15e   :  { %552 = vtanh.f32 %v437_v32 }
 0x15f   :  { %554 = vrcp.f32 %v814_v33 }
 0x161   :  { %v420_v40 = vpop.f32.mrf.mxu2 }
 0x162   :  { %v430_v42 = vadd.f32 %v420_v40, %v122_v31  ;;  %v289_v31 = vor.u32 1.1754944e-38, %v288_v27 }
 0x164   :  { %v553_v47 = vpop.eup %552  ;;  %v438_v50 = vadd.f32 %v434_v41, %v430_v42 }
 0x165   :  { %v445_v51 = vsub.f32 %v553_v47, %v655_v7  ;;  %v555_v57 = vpop.eup %554 }
 0x166   :  { %556 = vtanh.f32 %v438_v50  ;;  %v278_v2 = vmul.f32 %v555_v57, %v814_v33  ;;  %vm283_vm13 = vweird.f32 %v555_v57 }
 0x167   :  { %v449_v55 = vmul.f32 %v445_v51, %v245_v53  ;;  %vm284_vm15 = vmor %vm282_vm14, %vm283_vm13 }
 0x168   :  { %v279_v11 = vsub.f32 1.0, %v278_v2 }
 0x169   :  { %v453_v59 = vadd.f32 %v449_v55, %v655_v7  ;;  %v423_v61 = vpop.f32.mrf.mxu2 }
 0x16a   :  { %v431_v63 = vadd.f32 %v423_v61, %v125_v52  ;;  %v280_v19 = vmul.f32 %v555_v57, %v279_v11 }
 0x16b   :  { %457 = vst [vmem:[#allocation2] sm:$0xff] %v453_v59 }
 0x16c   :  { %v557_v6 = vpop.eup %556  ;;  %v439_v9 = vadd.f32 %v435_v62, %v431_v63  ;;  %v281_v25 = vadd.f32 %v555_v57, %v280_v19 }
 0x16d   :  { %v446_v7 = vsub.f32 %v557_v6, %v645_v5 }
 0x16e   :  { %558 = vtanh.f32 %v439_v9  ;;  %v285_v29 = vsel %vm284_vm15, %v555_v57, %v281_v25 }
 0x16f   :  { %v450_v12 = vmul.f32 %v446_v7, %v260_v10  ;;  %v290_v35 = vsel %vm287_vm1, %v289_v31, %v285_v29 }
 0x171   :  { %v454_v26 = vadd.f32 %v450_v12, %v645_v5  ;;  %v426_v34 = vpop.f32.mrf.mxu2  ;;  %v275_v5 = vsel %vm272_vm12, %v274_v43, %v270_v20 }
 0x172   :  { %v432_v18 = vadd.f32 %v426_v34, %v128_v14 }
 0x173   :  { %458 = vst [vmem:[#allocation2 + $0x8] sm:$0xff] %v454_v26 }
 0x174   :  { %v559_v21 = vpop.eup %558  ;;  %v440_v23 = vadd.f32 %v436_v17, %v432_v18 }
 0x175   :  { %v447_v24 = vsub.f32 %v559_v21, %v635_v3 }
 0x176   :  { %560 = vtanh.f32 %v440_v23 }
 0x177   :  { %v451_v22 = vmul.f32 %v447_v24, %v275_v5 }
 0x179   :  { %v455_v49 = vadd.f32 %v451_v22, %v635_v3 }
 0x17b   :  { %459 = vst [vmem:[#allocation2 + $0x10] sm:$0xff] %v455_v49 }
 0x17c   :  { %v561_v30 = vpop.eup %560 }
 0x17d   :  { %v448_v32 = vsub.f32 %v561_v30, %v627_v1 }
 0x17f   :  { %v452_v36 = vmul.f32 %v448_v32, %v290_v35 }
 0x181   :  { %v456_v3 = vadd.f32 %v452_v36, %v627_v1 }
 0x183   :  { %460 = vst [vmem:[#allocation2 + $0x18] sm:$0xff] %v456_v3 }
 0x184   :  { %473 = dma.vmem_to_hbm [thread:$0]  %s466_s23, 512, %s468_s26, [#allocation3], %s589_s27, %s589_s27, %s590_s2  }
 0x185   :  { %586 = dma.done.wait [#allocation3], 512  }
 0x186   :  { %587 = vsyncadd [#allocation3], 4294966784 }
 0x187   :  { %478 = vsyncpa [#allocation3], 1 }

</bundles_post_ra>
